<compile_context>
chip_gen: v5e
topology: v5e:2x2
jax: 0.10.0
libtpu: 0.0.40
codegen_flags: <defaults>
</compile_context>

<pallas_src>
import math

import jax
import jax.numpy as jnp
from jax.experimental import pallas as pl
from jax.experimental.pallas import tpu as pltpu

# --- Conv hyperparameters (fixed by the module) ---
C_IN = 1
C_OUT = 32
KH, KW = 41, 11
SH, SW = 2, 2
PH, PW = 20, 5
K_FEAT = C_IN * KH * KW  # 451

# Lane-dim tile for large outputs (multiple of 128). Per-tile VMEM (bf16 patches,
# double-buffered) ~ 3.7 MiB, comfortably inside the default scoped VMEM on
# v5e / v6e / v7x.
_TILE_HW = 2048


def _conv_matmul_kernel(w_ref, b_ref, p_ref, o_ref):
    # w_ref: (C_OUT, K)        bf16 reshaped conv weight   (pinned)
    # b_ref: (C_OUT, 1)        f32 bias                    (pinned)
    # p_ref: (1, K, T_HW)      bf16 im2col patches, one image / HW tile
    # o_ref: (1, C_OUT, T_HW)  f32 output tile (lane-dense last dim)
    acc = jnp.dot(w_ref[...], p_ref[0], preferred_element_type=jnp.float32)
    o_ref[0] = acc + b_ref[...]


def conv2d_pallas(x, weight, bias):
    """x: (N, 1, H, W); weight: (32, 1, 41, 11); bias: (32,) -> (N, 32, H_out, W_out) f32."""
    n, c, h, w = x.shape
    assert c == C_IN
    h_out = (h + 2 * PH - KH) // SH + 1
    w_out = (w + 2 * PW - KW) // SW + 1
    hw = h_out * w_out

    # im2col in its native (N, K, H_out, W_out) layout (feature order = (c, kh, kw),
    # matching weight.reshape(C_OUT, K)). bf16 halves HBM traffic of the big tensor.
    patches = jax.lax.conv_general_dilated_patches(
        x.astype(jnp.bfloat16),
        filter_shape=(KH, KW),
        window_strides=(SH, SW),
        padding=((PH, PH), (PW, PW)),
    )  # (N, K_FEAT, H_out, W_out)
    patches = patches.reshape(n, K_FEAT, hw)

    w_mat = weight.reshape(C_OUT, K_FEAT).astype(jnp.bfloat16)  # (C_OUT, K)
    b_mat = bias.reshape(C_OUT, 1).astype(jnp.float32)          # (C_OUT, 1)

    # Tile the lane (HW) dim; use the full extent when HW is small (always legal).
    tile_hw = hw if hw <= _TILE_HW else _TILE_HW
    grid = (n, pl.cdiv(hw, tile_hw))

    out_flat = pl.pallas_call(
        _conv_matmul_kernel,
        out_shape=jax.ShapeDtypeStruct((n, C_OUT, hw), jnp.float32),
        grid=grid,
        in_specs=[
            pl.BlockSpec((C_OUT, K_FEAT), lambda i, j: (0, 0)),       # weight (pinned)
            pl.BlockSpec((C_OUT, 1), lambda i, j: (0, 0)),            # bias   (pinned)
            pl.BlockSpec((1, K_FEAT, tile_hw), lambda i, j: (i, 0, j)),  # patches
        ],
        out_specs=pl.BlockSpec((1, C_OUT, tile_hw), lambda i, j: (i, 0, j)),
        compiler_params=pltpu.CompilerParams(
            dimension_semantics=("parallel", "parallel"),
        ),
    )(w_mat, b_mat, patches)

    return out_flat.reshape(n, C_OUT, h_out, w_out)  # already NCHW, no transpose


def init_params(key):
    """Deterministic init matching PyTorch Conv2d default (uniform +/- 1/sqrt(fan_in))."""
    kw_key, kb_key = jax.random.split(key)
    fan_in = C_IN * KH * KW
    bound = 1.0 / math.sqrt(fan_in)
    weight = jax.random.uniform(
        kw_key, (C_OUT, C_IN, KH, KW), jnp.float32, -bound, bound
    )
    bias = jax.random.uniform(kb_key, (C_OUT,), jnp.float32, -bound, bound)
    return weight, bias


if __name__ == "__main__":
    key = jax.random.PRNGKey(0)
    k_x, k_p = jax.random.split(key)

    # Small shapes consistent with the module: N=2, C_in=1, H=W=16.
    x = jax.random.normal(k_x, (2, 1, 16, 16), jnp.float32)
    weight, bias = init_params(k_p)

    out = conv2d_pallas(x, weight, bias)
    jax.block_until_ready(out)

    # Sanity check against the pure-JAX f32 reference conv (bf16 MXU inputs with
    # f32 accumulation -> loosened tolerance).
    ref = jax.lax.conv_general_dilated(
        x, weight, window_strides=(SH, SW), padding=((PH, PH), (PW, PW)),
        dimension_numbers=("NCHW", "OIHW", "NCHW"),
    ) + bias.reshape(1, C_OUT, 1, 1)
    assert out.shape == (2, C_OUT, 8, 8), out.shape
    assert jnp.max(jnp.abs(out - ref)) < 5e-2, float(jnp.max(jnp.abs(out - ref)))

    print("KERNEL_OK")
</pallas_src>

<mosaic_0001>
module attributes {stable_mosaic.version = 11 : i64} {
  func.func @_conv_matmul_kernel(%arg0: i32, %arg1: i32, %arg2: memref<32x451xbf16, #tpu.memory_space<vmem>>, %arg3: memref<32x1xf32, #tpu.memory_space<vmem>>, %arg4: memref<1x451x64xbf16, #tpu.memory_space<vmem>>, %arg5: memref<1x32x64xf32, #tpu.memory_space<vmem>>) attributes {dimension_semantics = [#tpu.dimension_semantics<parallel>, #tpu.dimension_semantics<parallel>], iteration_bounds = array<i64: 2, 1>, scalar_prefetch = 0 : i64, scratch_operands = 0 : i64, tpu.core_type = #tpu.core_type<tc>, window_params = [{pipeline_mode = #tpu.pipeline_mode<synchronous>, transform_indices = @transform_0, window_bounds = array<i64: 32, 451>}, {pipeline_mode = #tpu.pipeline_mode<synchronous>, transform_indices = @transform_1, window_bounds = array<i64: 32, 1>}, {transform_indices = @transform_2, window_bounds = array<i64: 1, 451, 64>}, {transform_indices = @transform_3, window_bounds = array<i64: 1, 32, 64>}]} {
    %c0 = arith.constant 0 : index
    %c0_0 = arith.constant 0 : index
    %0 = vector.load %arg2[%c0, %c0_0] : memref<32x451xbf16, #tpu.memory_space<vmem>>, vector<32x451xbf16>
    %c0_1 = arith.constant 0 : index
    %c0_2 = arith.constant 0 : index
    %c0_3 = arith.constant 0 : index
    %1 = vector.load %arg4[%c0_1, %c0_2, %c0_3] : memref<1x451x64xbf16, #tpu.memory_space<vmem>>, vector<1x451x64xbf16>
    %2 = vector.shape_cast %1 : vector<1x451x64xbf16> to vector<451x64xbf16>
    %cst = arith.constant dense<0.000000e+00> : vector<32x64xf32>
    %3 = tpu.matmul %0, %2, %cst {dimension_numbers = #tpu.dot_dimension_numbers<[1], [0], [0], [1], [0, 0, 1, 1], [], []>} : vector<32x451xbf16>, vector<451x64xbf16>, vector<32x64xf32> -> vector<32x64xf32>
    %c0_4 = arith.constant 0 : index
    %c0_5 = arith.constant 0 : index
    %4 = vector.load %arg3[%c0_4, %c0_5] : memref<32x1xf32, #tpu.memory_space<vmem>>, vector<32x1xf32>
    %5 = vector.broadcast %4 : vector<32x1xf32> to vector<32x64xf32>
    %6 = arith.addf %3, %5 : vector<32x64xf32>
    %c0_6 = arith.constant 0 : index
    %c0_7 = arith.constant 0 : index
    %c0_8 = arith.constant 0 : index
    %7 = vector.load %arg5[%c0_6, %c0_7, %c0_8] : memref<1x32x64xf32, #tpu.memory_space<vmem>>, vector<1x32x64xf32>
    %8 = vector.shape_cast %7 : vector<1x32x64xf32> to vector<32x64xf32>
    %9 = vector.shape_cast %6 : vector<32x64xf32> to vector<1x32x64xf32>
    tpu.vector_store %arg5[%c0_6, %c0_7, %c0_8], %9 {strides = array<i32>} : memref<1x32x64xf32, #tpu.memory_space<vmem>>, vector<1x32x64xf32>,
    return
  }
  func.func @transform_0(%arg0: i32, %arg1: i32) -> (i32, i32) {
    %c0_i32 = arith.constant 0 : i32
    %c0_i32_0 = arith.constant 0 : i32
    %c0_i32_1 = arith.constant 0 : i32
    return %c0_i32, %c0_i32_0 : i32, i32
  }
  func.func @transform_1(%arg0: i32, %arg1: i32) -> (i32, i32) {
    %c0_i32 = arith.constant 0 : i32
    %c0_i32_0 = arith.constant 0 : i32
    %c0_i32_1 = arith.constant 0 : i32
    return %c0_i32, %c0_i32_0 : i32, i32
  }
  func.func @transform_2(%arg0: i32, %arg1: i32) -> (i32, i32, i32) {
    %c0_i32 = arith.constant 0 : i32
    %c0_i32_0 = arith.constant 0 : i32
    return %arg0, %c0_i32, %arg1 : i32, i32, i32
  }
  func.func @transform_3(%arg0: i32, %arg1: i32) -> (i32, i32, i32) {
    %c0_i32 = arith.constant 0 : i32
    %c0_i32_0 = arith.constant 0 : i32
    return %arg0, %c0_i32, %arg1 : i32, i32, i32
  }
}

</mosaic_0001>

<bundles_post_ra>
// kernel: tpu_custom_call.1
= control target key start
LH: loop header
LB: loop body
LE: loop exit
PB: predicated region body
PF: predicated region fallthrough
CT: control target
= control target key end

     0   :  { %8 = vsyncpa [#allocation3], 0  ;;  %s1249_s0 = inlined_call_operand.vmem [shape: bf16[32,451], index: 0, kind: input, shape index: {}]   ;;  %s1250_s1 = inlined_call_operand.vmem [shape: f32[32,1], index: 1, kind: input, shape index: {}]   ;;  %s1251_s2 = inlined_call_operand.vmem [shape: bf16[2,451,64], index: 2, kind: input, shape index: {}]   ;;  %s1252_s3 = inlined_call_operand.hbm [shape: f32[2,32,64], index: 3, kind: output, shape index: {}]  }
   0x1   :  { %10 = vsyncpa [#allocation3 + $0x1], 0  ;;  %s1044_s12 = smov 0   ;;  %s1046_s13 = smov 0  }
   0x2   :  { %s1048_s14 = smov 0   ;;  %s1050_s15 = smov 0  }
   0x3   :  { %s1052_s16 = smov 0   ;;  %s1054_s17 = smov 0  }
   0x4 LB: > { %s683_s18 = sadd.s32 4294967295, %s1018_s17   ;;  %s684_s19 = sadd.s32 4294967294, %s1018_s17   ;;  %s1018_s17 = sphi %s1054_s17, %s16_s17   ;;  %s1014_s16 = sphi %s1052_s16, %s1259_s16   ;;  %s1010_s15 = sphi %s1050_s15, %s1258_s15   ;;  %s1006_s14 = sphi %s1048_s14, %s1257_s14   ;;  %s1002_s13 = sphi %s1046_s13, %s1256_s13   ;;  %s998_s12 = sphi %s1044_s12, %s1255_s12  }
   0x5   : > { %s28_s20 = sadd.s32 1, %s1014_s16  ;;  %s107_s21 = sadd.s32 1, %s1006_s14 }
   0x6   : > { %p30_p0 = scmp.ge.s32.totalorder %s28_s20, 2  ;;  %p117_p1 = scmp.ne.s32.totalorder %s1006_s14, %s1002_s13 }
   0x7   : > { %p118_p2 = scmp.eq.s32.totalorder %s683_s18, 1  ;;  %p123_p3 = scmp.ne.s32.totalorder %s1002_s13, %s998_s12 }
   0x8   : > { %s1261_s20 = smov (%p30_p0, %s28_s20), 0  ;;  %p124_p5 = scmp.eq.s32.totalorder %s684_s19, 1 }
   0x9   : > { %p1084_p4 = por %p118_p2, %p117_p1  ;;  %s102_s23 = ssub.s32 %s1014_s16, %s1261_s20 }
   0xa   : > { %p687_p6 = scmp.ge.s32.totalorder %s1018_s17, 1  ;;  %p105_p7 = scmp.eq.s32.totalorder %s102_s23, 0 }
   0xb   : > { %p1091_p8 = por %p124_p5, %p123_p3  ;;  %p159_p9 = scmp.lt.s32.totalorder %s1018_s17, 3 }
   0xc   : > { %s1097_s25 = scalar_select %p105_p7, %s1006_s14, %s107_s21  }
   0xd   : > { %p160_p10 = pnand %p687_p6, %p159_p9 }
   0xe   : > { %p186_p11 = scmp.lt.s32.totalorder (!%p160_p10), %s1010_s15, 1  ;;  %s183_s11 = sand.u32 (!%p160_p10), 1, %s1002_s13  }
   0xf   : > { %163 = sbr.rel (%p160_p10) target bundleno = 223 (0xdf), region = 32  ;;  %s877_s19 = sshll.u32 (!%p160_p10), %s1010_s15, 5 }
  0x10   : > { %s960_s7 = scalar_lea.hbm (!%p160_p10), %s1252_s3, 64 }
  0x14   : > { %s187_s26 = scalar_select %p186_p11, %s1010_s15, 1  ;;  %vm500_vm0 = vcmask 1040384   ;;  %vm501_vm1 = vcmask 1041408   ;;  %v1020_v3 = vmov 65535   ;;  %v1021_v10 = vmov 0   ;;  %v260_v21 = vld [vmem:[%s1250_s1] sm:$0xff] }
  0x15   : > { %v502_v4 = vsel %vm500_vm0, 4294967295, %v1020_v3  ;;  %938 = vset.pattern.permute.xlu0 %v1021_v10  ;;  %939 = vset.pattern.permute.xlu1 %v1021_v10  ;;  %v261_v29 = vld [vmem:[%s1250_s1 + $0x8] sm:$0xff]  ;;  %v262_v30 = vld [vmem:[%s1250_s1 + $0x10] sm:$0xff]  ;;  %v702_v34 = vld [vmem:[%s1249_s0 + $0x18] sm:$0xf0]  ;;  %vm493_vm2 = vcmask 547840  }
  0x16   : > { %s878_s27 = smul.u32 228, %s187_s26  ;;  %v503_v11 = vsel %vm501_vm1, %v502_v4, 0  ;;  %266 = vperm.xlu0 %938, %v260_v21   ;;  %276 = vperm.xlu1 %939, %v262_v30   ;;  %v842_v33 = vld [vmem:[%s1249_s0 + $0xc] sm:$0xf]  ;;  %v263_v39 = vld [vmem:[%s1250_s1 + $0x18] sm:$0xff]  ;;  %vm583_vm3 = vcmask 523264   ;;  %s601_s26 = scalar_lea.hbm %s1252_s3, %s877_s19 }
  0x17   : > { %v705_v38 = vor.u32 %v842_v33, %v702_v34  ;;  %v692_v40 = vld [vmem:[%s1249_s0] sm:$0xf]  ;;  %v843_v41 = vld [vmem:[%s1249_s0 + $0xc] sm:$0xf0]  ;;  %v841_v42 = vld [vmem:[%s1249_s0 + $0x4] sm:$0xf] }
  0x18   : > { %s1104_s30 = scalar_lea.vmem %s1251_s2, %s878_s27  ;;  %v694_v45 = vld [vmem:[%s1249_s0 + $0x10] sm:$0xf0]  ;;  %v700_v47 = vld [vmem:[%s1249_s0 + $0x8] sm:$0xf]  ;;  %v844_v48 = vld [vmem:[%s1249_s0 + $0x14] sm:$0xf0]  ;;  %v693_v49 = vor.u32 %v843_v41, %v692_v40 }
  0x19   : > { %v856_v0 = vld [vmem:[%s1104_s30 + $0x38] sm:$0xff]  ;;  %v855_v5 = vld [vmem:[%s1104_s30 + $0x30] sm:$0xff]  ;;  %v259_v7 = vld [vmem:[%s1104_s30 + $0xe0] sm:$0x3]  ;;  %v697_v50 = vor.u32 %v841_v42, %v694_v45  ;;  %v701_v51 = vor.u32 %v844_v48, %v700_v47  ;;  %s604_s28 = sshll.u32 %s601_s26, 4  ;;  %s589_s15 = scalar_lea.sflag [#allocation3], %s183_s11  ;;  %s605_s28 = int_to_ptr.hbm [resolvable:$true] %s604_s28 }
  0x1a   : > { %v864_v1 = vld [vmem:[%s1104_s30 + $0x78] sm:$0xff]  ;;  %507 = vmatpush.bf16.msra.mxu0 %v856_v0  ;;  %v863_v6 = vld [vmem:[%s1104_s30 + $0x70] sm:$0xff]  ;;  %v435_v9 = vunpack.c.l.b16 %v259_v7  ;;  %v854_v13 = vld [vmem:[%s1104_s30 + $0x28] sm:$0xff]  ;;  %s954_s29 = sshra.s32 %s605_s28, 4  ;;  %s955_s29 = int_to_ptr.hbm [resolvable:$true] %s954_s29 }
  0x1b   : > { %v872_v2 = vld [vmem:[%s1104_s30 + $0xb8] sm:$0xff]  ;;  %526 = vmatpush.bf16.msra.mxu1 %v864_v1  ;;  %v871_v8 = vld [vmem:[%s1104_s30 + $0xb0] sm:$0xff]  ;;  %v862_v14 = vld [vmem:[%s1104_s30 + $0x68] sm:$0xff]  ;;  %s956_s4 = scalar_lea.hbm %s955_s29, 32  ;;  %p961_p1 = scmp.lt.s32.totalorder %s955_s29, %s1252_s3 }
  0x1c   : > { %545 = vmatpush.bf16.msra.mxu2 %v872_v2  ;;  %v464_v12 = vpack.c.b16 %v435_v9, %v435_v9  ;;  %v870_v16 = vld [vmem:[%s1104_s30 + $0xa8] sm:$0xff]  ;;  %v876_v17 = vld [vmem:[%s1104_s30 + $0xd8] sm:$0xff]  ;;  %v853_v18 = vld [vmem:[%s1104_s30 + $0x20] sm:$0xff]  ;;  %p957_p12 = scmp.ne.s32.totalorder %s955_s29, %s956_s4  ;;  %p962_p2 = scmp.lt.s32.totalorder %s960_s7, %s956_s4 }
  0x1d   : > { %v861_v19 = vld [vmem:[%s1104_s30 + $0x60] sm:$0xff]  ;;  %v875_v22 = vld [vmem:[%s1104_s30 + $0xd0] sm:$0xff]  ;;  %v852_v23 = vld [vmem:[%s1104_s30 + $0x18] sm:$0xff] }
  0x1e   : > { %508 = vmatpush.bf16.msra.mxu0 %v855_v5  ;;  %v505_v15 = vand.u32 %v503_v11, %v464_v12  ;;  %v869_v20 = vld [vmem:[%s1104_s30 + $0xa0] sm:$0xff]  ;;  %v860_v24 = vld [vmem:[%s1104_s30 + $0x58] sm:$0xff]  ;;  %v874_v26 = vld [vmem:[%s1104_s30 + $0xc8] sm:$0xff]  ;;  %271 = vperm.xlu0 %938, %v261_v29   ;;  %p958_p13 = pnand %p957_p12, %p1084_p4  ;;  %p963_p3 = por %p962_p2, %p961_p1 }
  0x1f   : > { %527 = vmatpush.bf16.msra.mxu1 %v863_v6  ;;  %v868_v25 = vld [vmem:[%s1104_s30 + $0x98] sm:$0xff]  ;;  %v851_v27 = vld [vmem:[%s1104_s30 + $0x10] sm:$0xff]  ;;  %v873_v32 = vld [vmem:[%s1104_s30 + $0xc0] sm:$0xff]  ;;  %281 = vperm.xlu1 %939, %v263_v39  }
  0x20   : > { %546 = vmatpush.bf16.msra.mxu2 %v871_v8  ;;  %567 = vmatpush.bf16.msra.mxu3 %v505_v15  ;;  %v859_v28 = vld [vmem:[%s1104_s30 + $0x50] sm:$0xff]  ;;  %v850_v35 = vld [vmem:[%s1104_s30 + $0x8] sm:$0xff]  ;;  %v849_v43 = vld [vmem:[%s1104_s30] sm:$0xff]  ;;  %p959_p0 = pneg %p958_p13 }
  0x21   : > { %v867_v31 = vld [vmem:[%s1104_s30 + $0x90] sm:$0xff]  ;;  %v858_v36 = vld [vmem:[%s1104_s30 + $0x48] sm:$0xff]  ;;  %v857_v44 = vld [vmem:[%s1104_s30 + $0x40] sm:$0xff] }
  0x22   : > { %509 = vmatpush.bf16.msra.mxu0 %v854_v13  ;;  %v866_v37 = vld [vmem:[%s1104_s30 + $0x88] sm:$0xff]  ;;  %v865_v46 = vld [vmem:[%s1104_s30 + $0x80] sm:$0xff]  ;;  %v718_v53 = vld [vmem:[%s1249_s0 + $0x38] sm:$0xf0]  ;;  %s688_s30 = sshll.u32 %s183_s11, 5  ;;  %p964_p5 = pnand %p963_p3, %p959_p0 }
  0x23   : > { %528 = vmatpush.bf16.msra.mxu1 %v862_v14  ;;  %v846_v52 = vld [vmem:[%s1249_s0 + $0x2c] sm:$0xf]  ;;  %v708_v55 = vld [vmem:[%s1249_s0 + $0x20] sm:$0xf]  ;;  %v847_v56 = vld [vmem:[%s1249_s0 + $0x2c] sm:$0xf0] }
  0x24   : > { %547 = vmatpush.bf16.msra.mxu2 %v870_v16  ;;  %568 = vmatpush.bf16.msra.mxu3 %v876_v17  ;;  %v721_v54 = vor.u32 %v846_v52, %v718_v53  ;;  %v845_v57 = vld [vmem:[%s1249_s0 + $0x24] sm:$0xf]  ;;  %v710_v58 = vld [vmem:[%s1249_s0 + $0x30] sm:$0xf0]  ;;  %v716_v59 = vld [vmem:[%s1249_s0 + $0x28] sm:$0xf]  ;;  %v709_v61 = vor.u32 %v847_v56, %v708_v55 }
  0x25   : > { %v848_v60 = vld [vmem:[%s1249_s0 + $0x34] sm:$0xf0]  ;;  %v713_v62 = vor.u32 %v845_v57, %v710_v58  ;;  %s1200_s18 = scalar_lea.vmem [#allocation2], %s688_s30 }
  0x26   : > { %510 = vmatpush.bf16.msra.mxu0 %v853_v18  ;;  %v717_v63 = vor.u32 %v848_v60, %v716_v59  ;;  %s602_s27 = sshll.u32 %s1200_s18, 4  ;;  %s603_s27 = int_to_ptr.vmem [resolvable:$true] %s602_s27 }
  0x27   : > { %529 = vmatpush.bf16.msra.mxu1 %v861_v19 }
  0x28   : > { %548 = vmatpush.bf16.msra.mxu2 %v869_v20  ;;  %569 = vmatpush.bf16.msra.mxu3 %v875_v22 }
  0x2a   : > { %511 = vmatpush.bf16.msra.mxu0 %v852_v23 }
  0x2b   : > { %530 = vmatpush.bf16.msra.mxu1 %v860_v24 }
  0x2c   : > { %549 = vmatpush.bf16.msra.mxu2 %v868_v25  ;;  %570 = vmatpush.bf16.msra.mxu3 %v874_v26 }
  0x2e   : > { %512 = vmatpush.bf16.msra.mxu0 %v851_v27 }
  0x2f   : > { %531 = vmatpush.bf16.msra.mxu1 %v859_v28 }
  0x30   : > { %550 = vmatpush.bf16.msra.mxu2 %v867_v31  ;;  %571 = vmatpush.bf16.msra.mxu3 %v873_v32 }
  0x32   : > { %513 = vmatpush.bf16.msra.mxu0 %v850_v35 }
  0x33   : > { %532 = vmatpush.bf16.msra.mxu1 %v858_v36  ;;  %834 = vmatmul.msk.bf16.vlgmr.msra.gmra.mxu3 %vm493_vm2, %v705_v38 }
  0x34   : > { %551 = vmatpush.bf16.msra.mxu2 %v866_v37 }
  0x36   : > { %514 = vmatpush.bf16.msra.mxu0 %v849_v43 }
  0x37   : > { %533 = vmatpush.bf16.msra.mxu1 %v857_v44 }
  0x38   : > { %552 = vmatpush.bf16.msra.mxu2 %v865_v46 }
  0x39   : > { %515 = vmatmul.bf16.vlgmr.msra.gmra.mxu0 %v693_v49 }
  0x3a   : > { %534 = vmatmul.bf16.vlgmr.msra.gmra.mxu1 %v697_v50 }
  0x3b   : > { %553 = vmatmul.bf16.vlgmr.msra.gmra.mxu2 %v701_v51 }
  0x43   : > { %835 = vmatmul.msk.bf16.gmra.mxu3 %vm493_vm2, %v721_v54 }
  0x49   : > { %520 = vmatmul.bf16.gmra.mxu0 %v709_v61 }
  0x4a   : > { %539 = vmatmul.bf16.gmra.mxu1 %v713_v62 }
  0x4b   : > { %558 = vmatmul.bf16.gmra.mxu2 %v717_v63 }
  0x88   : > { %v267_v0 = vpop.permute.xlu0 %266  ;;  %v277_v15 = vpop.permute.xlu1 %276 }
  0x90   : > { %v272_v7 = vpop.permute.xlu0 %271 }
  0x91   : > { %v282_v27 = vpop.permute.xlu1 %281 }
  0xb6   : > { %v516_v1 = vpop.f32.mrf.mxu0  ;;  %v573_v4 = vpop.f32.mrf.mxu3 }
  0xb7   : > { %v535_v2 = vpop.f32.mrf.mxu1  ;;  %v517_v3 = vadd.f32 %v516_v1, %v267_v0 }
  0xb9   : > { %v536_v5 = vadd.f32 %v535_v2, %v517_v3 }
  0xbe   : > { %v554_v6 = vpop.f32.mrf.mxu2  ;;  %v518_v9 = vpop.f32.mrf.mxu0 }
  0xbf   : > { %v555_v8 = vadd.f32 %v554_v6, %v536_v5  ;;  %v537_v10 = vpop.f32.mrf.mxu1  ;;  %v519_v12 = vadd.f32 %v518_v9, %v272_v7  ;;  %v575_v13 = vpop.f32.mrf.mxu3 }
  0xc1   : > { %v574_v11 = vadd.f32 %v573_v4, %v555_v8  ;;  %v538_v14 = vadd.f32 %v537_v10, %v519_v12 }
  0xc3   : > { %584 = vst.msk [vmem:[%s1200_s18] sm:$0xff] %vm583_vm3, %v574_v11 }
  0xc6   : > { %v556_v16 = vpop.f32.mrf.mxu2  ;;  %v521_v18 = vpop.f32.mrf.mxu0 }
  0xc7   : > { %v557_v17 = vadd.f32 %v556_v16, %v538_v14  ;;  %v522_v19 = vadd.f32 %v521_v18, %v277_v15  ;;  %v540_v21 = vpop.f32.mrf.mxu1  ;;  %v578_v23 = vpop.f32.mrf.mxu3 }
  0xc9   : > { %v576_v20 = vadd.f32 %v575_v13, %v557_v17  ;;  %v541_v22 = vadd.f32 %v540_v21, %v522_v19 }
  0xcb   : > { %585 = vst.msk [vmem:[%s1200_s18 + $0x8] sm:$0xff] %vm583_vm3, %v576_v20 }
  0xce   : > { %v559_v24 = vpop.f32.mrf.mxu2  ;;  %v523_v26 = vpop.f32.mrf.mxu0 }
  0xcf   : > { %v560_v25 = vadd.f32 %v559_v24, %v541_v22  ;;  %v524_v29 = vadd.f32 %v523_v26, %v282_v27  ;;  %v542_v30 = vpop.f32.mrf.mxu1  ;;  %v580_v34 = vpop.f32.mrf.mxu3 }
  0xd1   : > { %v579_v28 = vadd.f32 %v578_v23, %v560_v25  ;;  %v543_v31 = vadd.f32 %v542_v30, %v524_v29 }
  0xd3   : > { %586 = vst.msk [vmem:[%s1200_s18 + $0x10] sm:$0xff] %vm583_vm3, %v579_v28 }
  0xd6   : > { %v561_v32 = vpop.f32.mrf.mxu2 }
  0xd7   : > { %v562_v33 = vadd.f32 %v561_v32, %v543_v31 }
  0xd9   : > { %v581_v35 = vadd.f32 %v580_v34, %v562_v33 }
  0xdb   : > { %587 = vst.msk [vmem:[%s1200_s18 + $0x18] sm:$0xff] %vm583_vm3, %v581_v35 }
  0xdc   : > { %967 = shalt.err (!%p964_p5)
}
  0xdd   : > { %s1022_s10 = smov 128   ;;  %s1023_s11 = smov 8  }
  0xde   : > { %879 = dma.vmem_to_hbm [thread:$0]  (%p1084_p4), %s603_s27, 512, %s605_s28, %s589_s15, %s1022_s10, %s1022_s10, %s1023_s11  }
  0xdf PF: > { %p885_p6 = scmp.ge.s32.totalorder %s1018_s17, 2  ;;  %s619_s30 = sand.u32 1, %s998_s12  }
  0xe0   : > { %s620_s18 = scalar_lea.sflag [#allocation3], %s619_s30 }
  0xe1   : > { %p882_p7 = pnand %p885_p6, %p1091_p8 }
  0xe3   : > { %p883_p9 = pneg %p882_p7 }
  0xe5   : > { %993 = dma.done.wait (%p883_p9), %s620_s18, 512  }
  0xe6   : > { %995 = vsyncadd (%p883_p9), %s620_s18, 4294966784  ;;  %s16_s17 = sadd.s32 1, %s1018_s17   ;;  %s1255_s12 = smov %s1002_s13 }
  0xe7   : > { %p13_p10 = scmp.ge.s32.totalorder %s16_s17, 4   ;;  %s1256_s13 = smov %s1006_s14 }
  0xe8   : > { %s1257_s14 = smov %s1097_s25  ;;  %s1258_s15 = smov %s1014_s16 }
  0xe9   : > { %s1259_s16 = smov %s1261_s20  ;;  %15 = sbr.rel (!%p13_p10) target bundleno = 4 (0x4), region = 67 }
  0xee   :  { %626 = vsyncpa [#allocation3], 1 }
  0xef   :  { %628 = vsyncpa [#allocation3 + $0x1], 1 }

</bundles_post_ra>
